<compile_context>
chip_gen: v6e
topology: v6e:2x2x1
jax: 0.10.0
libtpu: 0.0.40
codegen_flags: <defaults>
</compile_context>

<pallas_src>
import jax
import jax.numpy as jnp
from jax.experimental import pallas as pl
from jax.experimental.pallas import tpu as pltpu


def logreg_kernel(x_ref, w_ref, b_ref, o_ref):
    # x_ref: (TB, F) VMEM, w_ref: (1, F) VMEM (resident), b_ref: (1, 1) SMEM, o_ref: (TB, 1)
    x = x_ref[...].astype(jnp.float32)          # (TB, F)
    w = w_ref[...].astype(jnp.float32)          # (1, F)  -> broadcast over sublanes
    # VPU multiply + cross-lane reduce (XLU) instead of an N=1 MXU matmul.
    logits = jnp.sum(x * w, axis=-1, keepdims=True) + b_ref[0, 0]   # (TB, 1), f32
    # sigmoid: exp on the EUP, approximate reciprocal on the EUP (VALU stays free).
    y = pl.reciprocal(1.0 + jnp.exp(-logits), approx=True)
    o_ref[...] = y.astype(o_ref.dtype)


def _pick_batch_tile(B, F, *, max_rows_per_tile=1024, vmem_budget_bytes=8 << 20):
    """Rows per tile: large enough to hide DMA setup, small enough for v7x VMEM."""
    lane_padded_f = max(F, 128)                       # VMEM lanes pad to 128
    rows_fit = vmem_budget_bytes // (2 * lane_padded_f * 4)   # 2 = double buffering, 4B f32
    tb = min(max_rows_per_tile, max(8, (rows_fit // 8) * 8))  # keep sublane-aligned
    if B <= tb:
        tb = B                                        # full-dim block is always legal
    return tb


def logistic_regression(x, weight, bias):
    """x: (B, F) f32, weight: (1, F) f32, bias: (1,) f32 -> (B, 1) f32.

    Matches torch.sigmoid(nn.Linear(F, 1)(x)).
    """
    B, F = x.shape
    b2d = bias.reshape(1, 1).astype(jnp.float32)

    tb = _pick_batch_tile(B, F)
    num_tiles = pl.cdiv(B, tb)

    return pl.pallas_call(
        logreg_kernel,
        out_shape=jax.ShapeDtypeStruct((B, 1), x.dtype),
        grid=(num_tiles,),
        in_specs=[
            pl.BlockSpec((tb, F), lambda i: (i, 0)),            # streamed batch tiles
            pl.BlockSpec((1, F), lambda i: (0, 0)),             # weight resident in VMEM
            pl.BlockSpec(memory_space=pltpu.MemorySpace.SMEM),  # bias scalar in SMEM
        ],
        out_specs=pl.BlockSpec((tb, 1), lambda i: (i, 0)),
        compiler_params=pltpu.CompilerParams(
            dimension_semantics=("parallel",),                  # shard tiles across v7x TCs
        ),
    )(x, weight, b2d)


if __name__ == "__main__":
    key = jax.random.PRNGKey(0)
    kx, kw, kb, kx2 = jax.random.split(key, 4)

    # Bank Marketing style: small feature count. Deterministic init.
    batch, n_features = 8, 16
    x = jax.random.normal(kx, (batch, n_features), dtype=jnp.float32)
    # nn.Linear(n_features, 1): weight (1, n_features), bias (1,)
    bound = 1.0 / (n_features ** 0.5)
    weight = jax.random.uniform(kw, (1, n_features), jnp.float32, -bound, bound)
    bias = jax.random.uniform(kb, (1,), jnp.float32, -bound, bound)

    # Small case (single tile).
    y = logistic_regression(x, weight, bias)
    jax.block_until_ready(y)
    y_ref = jax.nn.sigmoid(x @ weight.T + bias)
    assert y.shape == (batch, 1)
    assert jnp.allclose(y, y_ref, atol=2e-3, rtol=2e-3), "mismatch vs reference (small)"

    # Larger batch to exercise the tiled, pipelined grid path (2 tiles of 1024 rows).
    big_batch = 2048
    x_big = jax.random.normal(kx2, (big_batch, n_features), dtype=jnp.float32)
    y_big = logistic_regression(x_big, weight, bias)
    jax.block_until_ready(y_big)
    y_big_ref = jax.nn.sigmoid(x_big @ weight.T + bias)
    assert y_big.shape == (big_batch, 1)
    assert jnp.allclose(y_big, y_big_ref, atol=2e-3, rtol=2e-3), "mismatch vs reference (big)"

    print("KERNEL_OK")
</pallas_src>

<mosaic_0001>
module attributes {stable_mosaic.version = 11 : i64} {
  func.func @logreg_kernel(%arg0: i32, %arg1: memref<8x16xf32, #tpu.memory_space<vmem>>, %arg2: memref<1x16xf32, #tpu.memory_space<vmem>>, %arg3: memref<1x1xf32, #tpu.memory_space<smem>>, %arg4: memref<8x1xf32, #tpu.memory_space<vmem>>) attributes {dimension_semantics = [#tpu.dimension_semantics<parallel>], iteration_bounds = array<i64: 1>, scalar_prefetch = 0 : i64, scratch_operands = 0 : i64, tpu.core_type = #tpu.core_type<tc>, window_params = [{transform_indices = @transform_0, window_bounds = array<i64: 8, 16>}, {pipeline_mode = #tpu.pipeline_mode<synchronous>, transform_indices = @transform_1, window_bounds = array<i64: 1, 16>}, {transform_indices = @transform_2, window_bounds = array<i64: 1, 1>}, {transform_indices = @transform_3, window_bounds = array<i64: 8, 1>}]} {
    %c0 = arith.constant 0 : index
    %c0_0 = arith.constant 0 : index
    %0 = vector.load %arg1[%c0, %c0_0] : memref<8x16xf32, #tpu.memory_space<vmem>>, vector<8x16xf32>
    %c0_1 = arith.constant 0 : index
    %c0_2 = arith.constant 0 : index
    %1 = vector.load %arg2[%c0_1, %c0_2] : memref<1x16xf32, #tpu.memory_space<vmem>>, vector<1x16xf32>
    %2 = vector.broadcast %1 : vector<1x16xf32> to vector<8x16xf32>
    %3 = arith.mulf %0, %2 : vector<8x16xf32>
    %cst = arith.constant dense<0.000000e+00> : vector<8xf32>
    %4 = vector.multi_reduction <add>, %3, %cst [1] : vector<8x16xf32> to vector<8xf32>
    %5 = vector.shape_cast %4 : vector<8xf32> to vector<8x1xf32>
    %c0_3 = arith.constant 0 : index
    %c0_4 = arith.constant 0 : index
    %6 = memref.load %arg3[%c0_3, %c0_4] : memref<1x1xf32, #tpu.memory_space<smem>>
    %7 = vector.broadcast %6 : f32 to vector<8x1xf32>
    %8 = arith.addf %5, %7 : vector<8x1xf32>
    %cst_5 = arith.constant 0.000000e+00 : f32
    %9 = vector.broadcast %cst_5 : f32 to vector<8x1xf32>
    %10 = arith.subf %9, %8 : vector<8x1xf32>
    %11 = math.exp %10 : vector<8x1xf32>
    %cst_6 = arith.constant 1.000000e+00 : f32
    %12 = vector.broadcast %cst_6 : f32 to vector<8x1xf32>
    %13 = arith.addf %12, %11 : vector<8x1xf32>
    %14 = tpu.reciprocal %13 {approx = true} : vector<8x1xf32> -> vector<8x1xf32>
    %c0_7 = arith.constant 0 : index
    %c0_8 = arith.constant 0 : index
    %15 = vector.load %arg4[%c0_7, %c0_8] : memref<8x1xf32, #tpu.memory_space<vmem>>, vector<8x1xf32>
    tpu.vector_store %arg4[%c0_7, %c0_8], %14 {strides = array<i32>} : memref<8x1xf32, #tpu.memory_space<vmem>>, vector<8x1xf32>,
    return
  }
  func.func @transform_0(%arg0: i32) -> (i32, i32) {
    %c0_i32 = arith.constant 0 : i32
    %c0_i32_0 = arith.constant 0 : i32
    return %arg0, %c0_i32 : i32, i32
  }
  func.func @transform_1(%arg0: i32) -> (i32, i32) {
    %c0_i32 = arith.constant 0 : i32
    %c0_i32_0 = arith.constant 0 : i32
    %c0_i32_1 = arith.constant 0 : i32
    return %c0_i32, %c0_i32_0 : i32, i32
  }
  func.func @transform_2(%arg0: i32) -> (i32, i32) {
    %c0_i32 = arith.constant 0 : i32
    %c0_i32_0 = arith.constant 0 : i32
    %c0_i32_1 = arith.constant 0 : i32
    return %c0_i32, %c0_i32_0 : i32, i32
  }
  func.func @transform_3(%arg0: i32) -> (i32, i32) {
    %c0_i32 = arith.constant 0 : i32
    %c0_i32_0 = arith.constant 0 : i32
    return %arg0, %c0_i32 : i32, i32
  }
}

</mosaic_0001>

<bundles_post_ra>
// kernel: tpu_custom_call.1
= control target key start
LH: loop header
LB: loop body
LE: loop exit
PB: predicated region body
PF: predicated region fallthrough
CT: control target
= control target key end

     0   :  { %9 = vsyncpa [#allocation4], 0  ;;  %s83_s12 = smov [#allocation3]   ;;  %s116_s0 = inlined_call_operand.hbm [shape: f32[8,16], index: 0, kind: input, shape index: {}]   ;;  %s117_s1 = inlined_call_operand.vmem [shape: f32[1,16], index: 1, kind: input, shape index: {}]   ;;  %s118_s2 = inlined_call_operand.<no memory space> [shape: f32[1,1], index: 2, kind: input, shape index: {}]   ;;  %s119_s3 = inlined_call_operand.vmem [shape: f32[8,1], index: 3, kind: output, shape index: {}]  }
   0x1   :  { %s16_s13 = sshll.u32 %s83_s12, 4  ;;  %s17_s13 = int_to_ptr.vmem [resolvable:$true] %s16_s13 }
   0x2   :  { %s69_s14 = scalar_lea.vmem %s17_s13, 128  ;;  %p74_p1 = scmp.lt.s32.totalorder %s17_s13, %s17_s13 }
   0x3   :  { %p70_p0 = scmp.ne.s32.totalorder %s17_s13, %s69_s14  ;;  %p75_p2 = scmp.lt.s32.totalorder %s69_s14, %s69_s14 }
   0x5   :  { %p76_p3 = por %p75_p2, %p74_p1 }
   0x7   :  { %p77_p4 = pnand %p76_p3, %p70_p0 }
   0x9   :  { %80 = shalt.err (!%p77_p4)
}
   0xa   :  { %19 = dma.hbm_to_vmem [thread:$0]  %s116_s0, 128, %s17_s13, [#allocation4]  }
   0xb   :  { %81 = dma.done.wait [#allocation4], 128  }
   0xc   :  { %82 = vsyncadd [#allocation4], 4294967168  ;;  %v27_v0 = vld [vmem:[#allocation3] sm:$0xff]  ;;  %vm36_vm0 = vcmask 130048   ;;  %v41_v4 = vstv %s118_s2  ;;  %vm48_vm1 = vcmask 7168  }
   0xd   :  { %v55_v1 = vld [vmem:[%s117_s1] ss:$0 sm:$0xff] }
   0xe   :  { %v35_v2 = vmul.f32 %v55_v1, %v27_v0 }
  0x10   :  { %v37_v3 = vsel %vm36_vm0, %v35_v2, 0.0 }
  0x11   :  { %38 = vadd.xlane.f32.xlu0 %v37_v3 }
  0x9a   :  { %v39_v5 = vpop.xlane.xlu0 %38 }
  0x9b   :  { %v42_v6 = vadd.f32 %v41_v4, %v39_v5 }
  0x9d   :  { %v43_v7 = vsub.f32 0.0, %v42_v6 }
  0x9f   :  { %v44_v8 = vmul.f32 1.442695, %v43_v7 }
  0xa1   :  { %57 = vpow2.f32 %v44_v8 }
  0xae   :  { %v58_v9 = vpop.eup %57 }
  0xaf   :  { %v46_v10 = vadd.f32 1.0, %v58_v9 }
  0xb1   :  { %59 = vrcp.f32 %v46_v10 }
  0xbe   :  { %v60_v11 = vpop.eup %59 }
  0xbf   :  { %49 = vst.msk [vmem:[%s119_s3] sm:$0xff] %vm48_vm1, %v60_v11 }
  0xc0   :  { %54 = vsyncpa [#allocation4], 1 }

</bundles_post_ra>
